<compile_context>
chip_gen: v7x
topology: tpu7x:2x2x1
jax: 0.10.0
libtpu: 0.0.40
codegen_flags: <defaults>
</compile_context>

<pallas_src>
import functools

import numpy as np
import jax
import jax.numpy as jnp
from jax import lax
from jax.experimental import pallas as pl
from jax.experimental.pallas import tpu as pltpu


class InvalidDimensionError(Exception):
    pass


class InvalidFileError(Exception):
    pass


LANES = 128      # TPU lane width
D_PAD = 128      # hidden dim padded to full lanes
V_PAD = 128      # vocab padded to full lanes
_VMEM_LIMIT = 32 * 1024 * 1024   # scoped-VMEM budget (safe on v5e/v6e/v7x)


# ----------------------------------------------------------------------------
# Kernel 1: fused clip + per-tile partial min/max (single full-res pass)
# ----------------------------------------------------------------------------
def _clip_minmax_kernel(x_ref, clip_ref, mn_ref, mx_ref, *, lo, hi):
    x = jnp.clip(x_ref[...], lo, hi)
    clip_ref[...] = x
    # lane-dense per-tile partials; no cross-tile dependence -> "parallel" grid
    mn_ref[...] = jnp.min(x, axis=0, keepdims=True)   # (1, LANES)
    mx_ref[...] = jnp.max(x, axis=0, keepdims=True)   # (1, LANES)


def clip_minmax_pallas(x, lo, hi, max_tile_rows=2048):
    """Clip x to [lo, hi] and compute its global min/max in ONE tiled pass.

    Returns (clipped_x, mn, mx).  The (x - mn) / (mx - mn) normalization is
    applied by the caller AFTER the bilinear resize (an affine map commutes
    with resize because the interpolation weights sum to 1), so the
    full-resolution image is read exactly once and written exactly once here.
    """
    orig_shape = x.shape
    flat = jnp.asarray(x, jnp.float32).reshape(-1)
    n_elem = flat.shape[0]

    rows = -(-n_elem // LANES)
    if rows <= max_tile_rows:
        tile_r = rows
        rows_p = rows
    else:
        tile_r = max_tile_rows                       # multiple of 8
        rows_p = ((rows + tile_r - 1) // tile_r) * tile_r
    total_p = rows_p * LANES
    if total_p != n_elem:
        # edge-pad with a real (duplicated) value so global min/max is unchanged
        flat = jnp.concatenate(
            [flat, jnp.broadcast_to(flat[-1], (total_p - n_elem,))])
    x2d = flat.reshape(rows_p, LANES)
    n_tiles = rows_p // tile_r

    clipped2d, part_mn, part_mx = pl.pallas_call(
        functools.partial(_clip_minmax_kernel, lo=lo, hi=hi),
        out_shape=(jax.ShapeDtypeStruct((rows_p, LANES), jnp.float32),
                   jax.ShapeDtypeStruct((n_tiles, LANES), jnp.float32),
                   jax.ShapeDtypeStruct((n_tiles, LANES), jnp.float32)),
        grid=(n_tiles,),
        in_specs=[pl.BlockSpec((tile_r, LANES), lambda i: (i, 0))],
        out_specs=(pl.BlockSpec((tile_r, LANES), lambda i: (i, 0)),
                   pl.BlockSpec((1, LANES), lambda i: (i, 0)),
                   pl.BlockSpec((1, LANES), lambda i: (i, 0))),
        compiler_params=pltpu.CompilerParams(
            dimension_semantics=("parallel",),    # v7x dual-TC can split tiles
            vmem_limit_bytes=_VMEM_LIMIT),
    )(x2d)

    # tiny (n_tiles, 128) final reduction in XLA
    mn = jnp.min(part_mn)
    mx = jnp.max(part_mx)
    clipped = clipped2d.reshape(-1)[:n_elem].reshape(orig_shape)
    return clipped, mn, mx


# ----------------------------------------------------------------------------
# Kernel 2: batched patch-embedding matmul (+ bias), mean already hoisted
# ----------------------------------------------------------------------------
def _patch_embed_kernel(x_ref, w_ref, b_ref, o_ref):
    # x_ref: (N, K) bf16, w_ref: (K, D) bf16, b_ref: (1, D) f32, o_ref: (N, D) f32
    o_ref[...] = (jnp.dot(x_ref[...], w_ref[...],
                          preferred_element_type=jnp.float32)
                  + b_ref[...])


def patch_embed_pallas(pooled, w, b):
    n, k = pooled.shape
    d = w.shape[1]
    return pl.pallas_call(
        _patch_embed_kernel,
        out_shape=jax.ShapeDtypeStruct((n, d), jnp.float32),
        grid=(1,),
        in_specs=[pl.BlockSpec((n, k), lambda i: (0, 0)),
                  pl.BlockSpec((k, d), lambda i: (0, 0)),
                  pl.BlockSpec((1, d), lambda i: (0, 0))],
        out_specs=pl.BlockSpec((n, d), lambda i: (0, 0)),
        compiler_params=pltpu.CompilerParams(
            dimension_semantics=("arbitrary",),
            vmem_limit_bytes=_VMEM_LIMIT),
    )(pooled, w, b)


# ----------------------------------------------------------------------------
# Kernel 3: fused greedy decode -- ONE pallas_call, in-kernel fori_loop over
#           tokens; weights VMEM-resident, recurrence carried in vregs
# ----------------------------------------------------------------------------
def _decode_kernel(init_ref, wh_ref, wlm_ref, tab_ref, tok_ref, *, vocab, n_steps):
    v_pad = wlm_ref.shape[1]
    lane = lax.broadcasted_iota(jnp.int32, (1, v_pad), 1)

    def step(t, e):
        # e: (1, D) bf16 carried embedding of the previous token
        h = jnp.maximum(jnp.dot(e, wh_ref[...],
                                preferred_element_type=jnp.float32), 0.0)
        logits = jnp.dot(h.astype(jnp.bfloat16), wlm_ref[...],
                         preferred_element_type=jnp.float32)       # (1, V) f32
        logits = jnp.where(lane < vocab, logits, -1e30)            # mask padded vocab
        mx = jnp.max(logits)
        nxt = jnp.min(jnp.where(logits == mx, lane, v_pad)).astype(jnp.int32)

        # write token t (lane-broadcast row store; tokens read back as [:, 0])
        tok_ref[pl.ds(t, 1), :] = jnp.broadcast_to(nxt, (1, tok_ref.shape[1]))

        # next-token embedding via in-VMEM one-hot matmul (== row gather)
        onehot = (lane == nxt).astype(jnp.bfloat16)                # (1, V)
        return jnp.dot(onehot, tab_ref[...],
                       preferred_element_type=jnp.float32).astype(jnp.bfloat16)

    lax.fori_loop(0, n_steps, step, init_ref[...].astype(jnp.bfloat16))


def decode_pallas(init_emb, w_h, w_lm, embed_tab, max_new_tokens, vocab):
    d = init_emb.shape[1]
    v = w_lm.shape[1]
    tok_lanes = pl.pallas_call(
        functools.partial(_decode_kernel, vocab=vocab, n_steps=max_new_tokens),
        out_shape=jax.ShapeDtypeStruct((max_new_tokens, LANES), jnp.int32),
        grid=(1,),
        in_specs=[pl.BlockSpec((1, d), lambda i: (0, 0)),
                  pl.BlockSpec((d, d), lambda i: (0, 0)),   # VMEM-resident
                  pl.BlockSpec((d, v), lambda i: (0, 0)),   # VMEM-resident
                  pl.BlockSpec((v, d), lambda i: (0, 0))],  # VMEM-resident
        out_specs=pl.BlockSpec((max_new_tokens, LANES), lambda i: (0, 0)),
        compiler_params=pltpu.CompilerParams(
            dimension_semantics=("arbitrary",),             # sequential recurrence
            vmem_limit_bytes=_VMEM_LIMIT),
    )(init_emb, w_h, w_lm, embed_tab)
    return tok_lanes[:, 0]                                  # (max_new_tokens,)


# ----------------------------------------------------------------------------
# mri_preprocess (semantics of the reference function's *output*)
# ----------------------------------------------------------------------------
def mri_preprocess(np_img):
    expected_dimensions = 4
    if np_img.ndim != expected_dimensions:
        raise InvalidDimensionError(
            f"The file has incorrect dimensions: expected {expected_dimensions}, "
            f"got {np_img.ndim}")
    x = jnp.asarray(np_img, dtype=jnp.float32)        # (N, H, W, C)
    n, h, w, _ = x.shape

    # channel 0 ("brain" window) sliced BEFORE any permute so the 4-channel
    # transpose is never built.  NOTE: the reference also computes
    # subdural/bone windows, but its final torch.cat uses the brain window
    # three times, so only the brain window reaches the output.
    brain = x[..., 0]                                  # (N, H, W)

    # single fused Pallas pass: clip [0, 80] + global min/max.
    clipped, mn, mx = clip_minmax_pallas(brain, 0.0, 80.0)
    # matches the PyTorch reference: a constant image yields 0/0 -> NaN
    scale = 1.0 / (mx - mn)

    # kornia.resize(bilinear) equivalent on ONE channel; the min-max affine
    # commutes through the linear resize, so it is applied at 224x224 only
    # (no full-resolution normalized writeback before the resize).
    # TODO(synk): fold the clip into a Pallas separable-resize kernel so the
    # full-res clipped image is never written to HBM at all.
    resized = jax.image.resize(clipped.reshape(n, 1, h, w), (n, 1, 224, 224),
                               method="bilinear", antialias=False)
    resized = (resized - mn) * scale                   # tiny affine at 224^2
    return jnp.broadcast_to(resized, (n, 3, 224, 224))


# ----------------------------------------------------------------------------
# Deterministic synthetic stand-in for the external VLM (encoder + llama)
# ----------------------------------------------------------------------------
class SyntheticVLM:
    def __init__(self, key, hidden=32, vocab=64, patch=16):
        self.hidden = hidden
        self.vocab = vocab
        self.patch = patch
        k1, k2, k3, k4 = jax.random.split(key, 4)
        k_in = 3 * patch * patch

        w_patch = 0.02 * jax.random.normal(k1, (k_in, hidden), jnp.float32)
        embed = 0.02 * jax.random.normal(k2, (vocab, hidden), jnp.float32)
        w_h = 0.02 * jax.random.normal(k3, (hidden, hidden), jnp.float32)
        w_lm = 0.02 * jax.random.normal(k4, (hidden, vocab), jnp.float32)

        def pad2(a, r, c):
            return jnp.zeros((r, c), a.dtype).at[:a.shape[0], :a.shape[1]].set(a)

        # zero-pad hidden/vocab axes to 128 lanes, cast to bf16 once (hoisted)
        self.w_patch = pad2(w_patch, k_in, D_PAD).astype(jnp.bfloat16)
        self.b_patch = jnp.zeros((1, D_PAD), jnp.float32)
        self.embed_table = pad2(embed, V_PAD, D_PAD).astype(jnp.bfloat16)
        self.w_h = pad2(w_h, D_PAD, D_PAD).astype(jnp.bfloat16)
        self.w_lm = pad2(w_lm, D_PAD, V_PAD).astype(jnp.bfloat16)

    # ---- image encoder: ViT-style patch embedding + mean pool --------------
    # mean_P(patches) @ W == mean_P(patches @ W): hoisting the mean turns
    # patch extraction into a strided average pool (no 6-D transpose, no
    # (N,P,K) patch tensor in HBM) and the whole batch becomes one small
    # (N, C*p*p) @ (C*p*p, D) MXU matmul in a single Pallas call.  Since the
    # pipeline feeds 3 identical channels, this also subsumes the channel fold.
    def encode_img(self, img):
        n, c, h, w = img.shape
        p = self.patch
        gh, gw = h // p, w // p
        # strided average pool over the patch grid (XLA reduce; reads img once)
        pooled = img.reshape(n, c, gh, p, gw, p).mean(axis=(2, 4))   # (N, C, p, p)
        pooled = pooled.reshape(n, c * p * p).astype(jnp.bfloat16)   # (N, K)
        emb = patch_embed_pallas(pooled, self.w_patch, self.b_patch)  # (N, D) f32
        return emb.astype(jnp.bfloat16)[None, :, :], None, None       # (1, N, D)

    # ---- deterministic char-level "llama_tokenizer" ----
    def tokenize(self, text, add_special_tokens=False):
        ids = [ord(ch) % self.vocab for ch in text] or [2]
        if add_special_tokens:
            ids = [1] + ids                                   # BOS
        return jnp.asarray(ids, dtype=jnp.int32)[None, :]     # (1, S)

    # ---- embed_tokens as a row gather from the padded table ----
    def embed_tokens(self, tok_ids):
        flat = tok_ids.reshape(-1)
        return jnp.take(self.embed_table, flat, axis=0)[None, :, :]  # (1, S, D)

    # ---- greedy "generate": one fused Pallas decode kernel, fixed shapes ----
    def generate(self, inputs_embeds, max_new_tokens=6, stop_token_seqs=(),
                 **unused_kwargs):
        # TODO(synk): nucleus sampling (do_sample / top_p), beams, repetition /
        # length penalties of HF generate() are not modeled; greedy decode only.
        init = inputs_embeds[0, -1:, :].astype(jnp.bfloat16)          # (1, D)
        toks = decode_pallas(init, self.w_h, self.w_lm, self.embed_table,
                             int(max_new_tokens), self.vocab)         # (T,)

        # post-hoc stop-sequence truncation (causally identical to the original
        # per-step break: tokens up to and including the matching tail are kept)
        tok_host = np.asarray(jax.device_get(toks)).tolist()
        keep = len(tok_host)
        for t in range(len(tok_host)):
            prefix = tok_host[:t + 1]
            if any(len(prefix) >= len(s) and prefix[-len(s):] == list(s)
                   for s in stop_token_seqs):
                keep = t + 1
                break
        return jnp.asarray(tok_host[:keep], dtype=jnp.int32)[None, :]  # (1, T_kept)

    def decode(self, token_ids):
        toks = np.asarray(token_ids)
        return "".join(chr(65 + (int(t) % 26)) for t in toks)


# ----------------------------------------------------------------------------
# The pipeline (mirrors ReportGenerationPipeline.forward)
# ----------------------------------------------------------------------------
class ReportGenerationPipeline:
    def __init__(self, model, **kwargs):
        self.model = model
        self.default_params = {
            "max_new_tokens": kwargs.get("max_new_tokens", 300),
            "num_beams": kwargs.get("num_beams", 1),
            "min_length": kwargs.get("min_length", 1),
            "top_p": kwargs.get("top_p", 0.9),
            "repetition_penalty": kwargs.get("repetition_penalty", 1.0),
            "length_penalty": kwargs.get("length_penalty", 1),
            "temperature": kwargs.get("temperature", 1.0),
            "stop_token_seqs": kwargs.get("stop_token_seqs",
                                          [(835,), (2277, 29937)]),
        }
        self.last_output_tokens = None

    def preprocess(self, image):
        preproc_img = mri_preprocess(image)
        img_emb, _, _ = self.model.encode_img(preproc_img)
        return img_emb

    def get_mixed_emb(self, prompt, img_emb):
        if prompt:
            prompt_segs = prompt.split("<ImageHere>")
            assert len(prompt_segs) == len(img_emb) + 1
            seg_tokens = [self.model.tokenize(seg, add_special_tokens=(i == 0))
                          for i, seg in enumerate(prompt_segs)]
            seg_embs = [self.model.embed_tokens(t) for t in seg_tokens]
            mixed_embs = [seg_embs[0], img_emb, seg_embs[1]]
            return jnp.concatenate(mixed_embs, axis=1)
        return img_emb

    def forward(self, model_input, **generate_kwargs):
        image = model_input[0]
        prompt = model_input[1]
        img_emb = self.preprocess(image)
        input_emb = self.get_mixed_emb(prompt, img_emb)
        outputs = self.model.generate(
            inputs_embeds=input_emb,
            max_new_tokens=self.default_params["max_new_tokens"],
            stop_token_seqs=self.default_params["stop_token_seqs"],
            num_beams=self.default_params["num_beams"],
            min_length=self.default_params["min_length"],
            top_p=self.default_params["top_p"],
            repetition_penalty=self.default_params["repetition_penalty"],
            length_penalty=self.default_params["length_penalty"],
            temperature=self.default_params["temperature"],
        )
        self.last_output_tokens = outputs

        # single device->host pull of the generated ids
        output_token = np.asarray(jax.device_get(outputs[0]))
        if output_token.shape[0] > 0 and int(output_token[0]) == 0:
            output_token = output_token[1:]
        if output_token.shape[0] > 0 and int(output_token[0]) == 1:
            output_token = output_token[1:]
        output_text = self.model.decode(output_token)
        output_text = output_text.split("###")[0]
        output_text = output_text.split("Assistant:")[-1].strip()
        return output_text

    __call__ = forward


# ----------------------------------------------------------------------------
if __name__ == "__main__":
    key = jax.random.PRNGKey(0)
    k_img, k_model = jax.random.split(key)

    # Synthetic 4-D "MRI/CT frames": (N, H, W, C) with HU-like value range.
    image = np.asarray(
        jax.random.uniform(k_img, (2, 16, 16, 4), minval=-200.0, maxval=400.0),
        dtype=np.float32)

    model = SyntheticVLM(k_model, hidden=32, vocab=64, patch=16)
    pipe = ReportGenerationPipeline(model, max_new_tokens=6)

    prompt = "Patient CT scan: <ImageHere> ###Assistant:"
    report_text = pipe.forward((image, prompt))

    jax.block_until_ready(pipe.last_output_tokens)
    assert isinstance(report_text, str)
    print("KERNEL_OK")
</pallas_src>

<mosaic_0001>
module attributes {stable_mosaic.version = 11 : i64} {
  func.func @_clip_minmax_kernel(%arg0: i32, %arg1: memref<4x128xf32, #tpu.memory_space<vmem>>, %arg2: memref<4x128xf32, #tpu.memory_space<vmem>>, %arg3: memref<1x128xf32, #tpu.memory_space<vmem>>, %arg4: memref<1x128xf32, #tpu.memory_space<vmem>>) attributes {dimension_semantics = [#tpu.dimension_semantics<parallel>], iteration_bounds = array<i64: 1>, scalar_prefetch = 0 : i64, scratch_operands = 0 : i64, tpu.core_type = #tpu.core_type<tc>, window_params = [{transform_indices = @transform_0, window_bounds = array<i64: 4, 128>}, {transform_indices = @transform_1, window_bounds = array<i64: 4, 128>}, {transform_indices = @transform_2, window_bounds = array<i64: 1, 128>}, {transform_indices = @transform_3, window_bounds = array<i64: 1, 128>}]} {
    %c0 = arith.constant 0 : index
    %c0_0 = arith.constant 0 : index
    %0 = vector.load %arg1[%c0, %c0_0] : memref<4x128xf32, #tpu.memory_space<vmem>>, vector<4x128xf32>
    %cst = arith.constant 0.000000e+00 : f32
    %cst_1 = arith.constant 8.000000e+01 : f32
    %1 = vector.broadcast %cst : f32 to vector<4x128xf32>
    %2 = arith.maximumf %1, %0 : vector<4x128xf32>
    %3 = vector.broadcast %cst_1 : f32 to vector<4x128xf32>
    %4 = arith.minimumf %3, %2 : vector<4x128xf32>
    %c0_2 = arith.constant 0 : index
    %c0_3 = arith.constant 0 : index
    %5 = vector.load %arg2[%c0_2, %c0_3] : memref<4x128xf32, #tpu.memory_space<vmem>>, vector<4x128xf32>
    tpu.vector_store %arg2[%c0_2, %c0_3], %4 {strides = array<i32>} : memref<4x128xf32, #tpu.memory_space<vmem>>, vector<4x128xf32>,
    %cst_4 = arith.constant dense<0x7F800000> : vector<128xf32>
    %6 = vector.multi_reduction <minimumf>, %4, %cst_4 [0] : vector<4x128xf32> to vector<128xf32>
    %7 = vector.shape_cast %6 : vector<128xf32> to vector<1x128xf32>
    %c0_5 = arith.constant 0 : index
    %c0_6 = arith.constant 0 : index
    %8 = vector.load %arg3[%c0_5, %c0_6] : memref<1x128xf32, #tpu.memory_space<vmem>>, vector<1x128xf32>
    tpu.vector_store %arg3[%c0_5, %c0_6], %7 {strides = array<i32>} : memref<1x128xf32, #tpu.memory_space<vmem>>, vector<1x128xf32>,
    %cst_7 = arith.constant dense<0xFF800000> : vector<128xf32>
    %9 = vector.multi_reduction <maximumf>, %4, %cst_7 [0] : vector<4x128xf32> to vector<128xf32>
    %10 = vector.shape_cast %9 : vector<128xf32> to vector<1x128xf32>
    %c0_8 = arith.constant 0 : index
    %c0_9 = arith.constant 0 : index
    %11 = vector.load %arg4[%c0_8, %c0_9] : memref<1x128xf32, #tpu.memory_space<vmem>>, vector<1x128xf32>
    tpu.vector_store %arg4[%c0_8, %c0_9], %10 {strides = array<i32>} : memref<1x128xf32, #tpu.memory_space<vmem>>, vector<1x128xf32>,
    return
  }
  func.func @transform_0(%arg0: i32) -> (i32, i32) {
    %c0_i32 = arith.constant 0 : i32
    %c0_i32_0 = arith.constant 0 : i32
    return %arg0, %c0_i32 : i32, i32
  }
  func.func @transform_1(%arg0: i32) -> (i32, i32) {
    %c0_i32 = arith.constant 0 : i32
    %c0_i32_0 = arith.constant 0 : i32
    return %arg0, %c0_i32 : i32, i32
  }
  func.func @transform_2(%arg0: i32) -> (i32, i32) {
    %c0_i32 = arith.constant 0 : i32
    %c0_i32_0 = arith.constant 0 : i32
    return %arg0, %c0_i32 : i32, i32
  }
  func.func @transform_3(%arg0: i32) -> (i32, i32) {
    %c0_i32 = arith.constant 0 : i32
    %c0_i32_0 = arith.constant 0 : i32
    return %arg0, %c0_i32 : i32, i32
  }
}

</mosaic_0001>

<bundles_post_ra>
// kernel: tpu_custom_call.1
= control target key start
LH: loop header
LB: loop body
LE: loop exit
PB: predicated region body
PF: predicated region fallthrough
CT: control target
= control target key end

     0   :  { %9 = vsyncpa [#allocation3], 0  ;;  %s266_s0 = inlined_call_operand.hbm [shape: f32[4,128], index: 0, kind: input, shape index: {}]   ;;  %s267_s1 = inlined_call_operand.hbm [shape: f32[4,128], index: 1, kind: output, shape index: {0}]   ;;  %s268_s2 = inlined_call_operand.hbm [shape: f32[1,128], index: 2, kind: output, shape index: {1}]   ;;  %s269_s3 = inlined_call_operand.hbm [shape: f32[1,128], index: 3, kind: output, shape index: {2}]  }
   0x1   :  { %10 = vsyncpa [#allocation4], 0 }
   0x2   :  { %11 = vsyncpa [#allocation7], 0  ;;  %s186_s12 = smov [#allocation2]   ;;  %s92_s16 = scalar_lea.hbm %s266_s0, 64 }
   0x3   :  { %s18_s13 = sshll.u32 %s186_s12, 4  ;;  %p93_p0 = scmp.ne.s32.totalorder %s266_s0, %s92_s16  ;;  %s19_s13 = int_to_ptr.vmem [resolvable:$true] %s18_s13 }
   0x4   :  { %p96_p1 = scmp.lt.u32.totalorder %s92_s16, %s266_s0 }
   0x6   :  { %p98_p2 = pnand %p96_p1, %p93_p0 }
   0x8   :  { %101 = shalt.err (!%p98_p2)
}
   0x9   :  { %s102_s21 = scalar_lea.vmem %s19_s13, 64  ;;  %p107_p4 = scmp.lt.s32.totalorder %s19_s13, %s19_s13 }
   0xa   :  { %p103_p3 = scmp.ne.s32.totalorder %s19_s13, %s102_s21  ;;  %p108_p5 = scmp.lt.s32.totalorder %s102_s21, %s102_s21 }
   0xc   :  { %p109_p6 = por %p108_p5, %p107_p4 }
   0xe   :  { %p110_p7 = pnand %p109_p6, %p103_p3 }
  0x10   :  { %113 = shalt.err (!%p110_p7)
}
  0x11   :  { %21 = dma.hbm_to_vmem [thread:$0]  %s266_s0, 64, %s19_s13, [#allocation3]  }
  0x12   :  { %180 = dma.done.wait [#allocation3], 64  }
  0x13   :  { %181 = vsyncadd [#allocation3], 4294967232  ;;  %v25_v0 = vld [vmem:[#allocation2] sm:$0xf]  ;;  %s187_s24 = smov [#allocation5]   ;;  %vm29_vm0 = vcmask 1043456  }
  0x14   :  { %s52_s25 = sshll.u32 %s187_s24, 4  ;;  %v26_v1 = vmax.f32 %v25_v0, 0.0  ;;  %s53_s25 = int_to_ptr.vmem [resolvable:$true] %s52_s25 }
  0x15   :  { %s114_s26 = scalar_lea.vmem %s53_s25, 64  ;;  %p119_p9 = scmp.lt.s32.totalorder %s53_s25, %s53_s25 }
  0x16   :  { %v27_v2 = vmin.f32 %v26_v1, 80.0  ;;  %p115_p8 = scmp.ne.s32.totalorder %s53_s25, %s114_s26  ;;  %p120_p10 = scmp.lt.s32.totalorder %s114_s26, %s114_s26 }
  0x18   :  { %v30_v3 = vsel %vm29_vm0, %v27_v2, inf  ;;  %28 = vst [vmem:[#allocation5] sm:$0xf] %v27_v2  ;;  %v38_v4 = vsel %vm29_vm0, %v27_v2, -inf  ;;  %p121_p11 = por %p120_p10, %p119_p9 }
  0x19   :  { %v31_v5 = vrot.slane %v30_v3, 4  ;;  %v39_v6 = vrot.slane %v38_v4, 4 }
  0x1a   :  { %p122_p12 = pnand %p121_p11, %p115_p8 }
  0x1c   :  { %125 = shalt.err (!%p122_p12)
}
  0x1d   :  { %s126_s28 = scalar_lea.hbm %s267_s1, 64 }
  0x1e   :  { %p127_p13 = scmp.ne.s32.totalorder %s267_s1, %s126_s28  ;;  %p130_p0 = scmp.lt.u32.totalorder %s126_s28, %s267_s1 }
  0x20   :  { %p132_p1 = pnand %p130_p0, %p127_p13 }
  0x22   :  { %135 = shalt.err (!%p132_p1)
}
  0x23   :  { %55 = dma.vmem_to_hbm [thread:$0]  %s53_s25, 64, %s267_s1, [#allocation4]   ;;  %v32_v7 = vmin.f32 %v30_v3, %v31_v5  ;;  %v40_v8 = vmax.f32 %v38_v4, %v39_v6 }
  0x24   :  { %s188_s8 = smov [#allocation6]   ;;  %s189_s10 = smov [#allocation8]  }
  0x25   :  { %v33_v9 = vrot.slane %v32_v7, 2  ;;  %v41_v10 = vrot.slane %v40_v8, 2  ;;  %s62_s9 = sshll.u32 %s188_s8, 4  ;;  %s72_s11 = sshll.u32 %s189_s10, 4  ;;  %s63_s9 = int_to_ptr.vmem [resolvable:$true] %s62_s9  ;;  %s234_s11 = int_to_ptr.vmem [resolvable:$true] %s72_s11 }
  0x26   :  { %s136_s1 = scalar_lea.vmem %s63_s9, 16  ;;  %s140_s12 = scalar_lea.vmem %s63_s9, 32 }
  0x27   :  { %v34_v11 = vmin.f32 %v32_v7, %v33_v9  ;;  %v42_v12 = vmax.f32 %v40_v8, %v41_v10  ;;  %p137_p2 = scmp.ne.s32.totalorder %s63_s9, %s136_s1  ;;  %p141_p3 = scmp.lt.s32.totalorder %s63_s9, %s63_s9 }
  0x28   :  { %p142_p4 = scmp.lt.s32.totalorder %s140_s12, %s136_s1 }
  0x29   :  { %v35_v13 = vrot.slane %v34_v11, 1  ;;  %v43_v14 = vrot.slane %v42_v12, 1 }
  0x2a   :  { %p143_p5 = por %p142_p4, %p141_p3 }
  0x2b   :  { %v36_v15 = vmin.f32 %v34_v11, %v35_v13  ;;  %v44_v16 = vmax.f32 %v42_v12, %v43_v14 }
  0x2c   :  { %p144_p6 = pnand %p143_p5, %p137_p2 }
  0x2d   :  { %37 = vst [vmem:[#allocation6] sm:$0x1] %v36_v15  ;;  %45 = vst [vmem:[#allocation8] sm:$0x1] %v44_v16 }
  0x2e   :  { %147 = shalt.err (!%p144_p6)
}
  0x2f   :  { %s148_s15 = scalar_lea.hbm %s268_s2, 16 }
  0x30   :  { %p149_p7 = scmp.ne.s32.totalorder %s268_s2, %s148_s15  ;;  %p152_p8 = scmp.lt.u32.totalorder %s148_s15, %s268_s2 }
  0x32   :  { %p154_p9 = pnand %p152_p8, %p149_p7 }
  0x34   :  { %157 = shalt.err (!%p154_p9)
}
  0x35   :  { %65 = dma.vmem_to_hbm [thread:$0]  %s63_s9, 16, %s268_s2, [#allocation7]  }
  0x36   :  { %s158_s22 = scalar_lea.vmem %s234_s11, 16  ;;  %s162_s23 = scalar_lea.vmem %s234_s11, 32 }
  0x37   :  { %p159_p10 = scmp.ne.s32.totalorder %s234_s11, %s158_s22  ;;  %p163_p11 = scmp.lt.s32.totalorder %s234_s11, %s234_s11 }
  0x38   :  { %p164_p12 = scmp.lt.s32.totalorder %s162_s23, %s158_s22 }
  0x3a   :  { %p165_p13 = por %p164_p12, %p163_p11 }
  0x3c   :  { %p166_p0 = pnand %p165_p13, %p159_p10 }
  0x3e   :  { %169 = shalt.err (!%p166_p0)
}
  0x3f   :  { %s170_s26 = scalar_lea.hbm %s269_s3, 16 }
  0x40   :  { %p171_p1 = scmp.ne.s32.totalorder %s269_s3, %s170_s26  ;;  %p174_p2 = scmp.lt.u32.totalorder %s170_s26, %s269_s3 }
  0x42   :  { %p176_p3 = pnand %p174_p2, %p171_p1 }
  0x44   :  { %179 = shalt.err (!%p176_p3)
}
  0x45   :  { %75 = dma.vmem_to_hbm [thread:$0]  %s234_s11, 16, %s269_s3, [#allocation7]  }
  0x46   :  { %182 = dma.done.wait [#allocation4], 64  }
  0x47   :  { %183 = vsyncadd [#allocation4], 4294967232 }
  0x48   :  { %184 = dma.done.wait [#allocation7], 32  }
  0x49   :  { %185 = vsyncadd [#allocation7], 4294967264 }
  0x4a   :  { %85 = vsyncpa [#allocation3], 1 }
  0x4b   :  { %86 = vsyncpa [#allocation4], 1 }
  0x4c   :  { %87 = vsyncpa [#allocation7], 1 }

</bundles_post_ra>
